<compile_context>
chip_gen: v6e
topology: v6e:2x2x1
jax: 0.10.0
libtpu: 0.0.40
codegen_flags: <defaults>
</compile_context>

<pallas_src>
import jax
import jax.numpy as jnp
from jax.experimental import pallas as pl
from jax.experimental.pallas import tpu as pltpu

MUL_CONST = 0.448
ADD_CONST = -0.08799999999999997

TARGET_BLOCK_BYTES = 2 * 1024 * 1024   # ~2 MiB blocks: >=85% of HBM roofline,
                                        # in+out double-buffered = 8 MiB (safe on all gens)
MIN_SPLIT_BYTES = 1 * 1024 * 1024       # split into >=2 blocks above this (v7x dual-TC)


def _round_up(a: int, b: int) -> int:
    return ((a + b - 1) // b) * b


def _mul_add_kernel(x_ref, o_ref):
    # One VPU mul + add per vreg; lane-dense, unmasked stores.
    o_ref[...] = (x_ref[...] * MUL_CONST + ADD_CONST).astype(o_ref.dtype)


def mul_add(x: jax.Array, donate_input: bool = False) -> jax.Array:
    """Elementwise x * 0.448 + (-0.088), matching the PyTorch forward."""
    orig_shape = x.shape
    dtype = x.dtype
    total = x.size
    if total == 0:
        return x

    itemsize = jnp.dtype(dtype).itemsize
    sublane = {4: 8, 2: 16, 1: 32}.get(itemsize, 8)   # dtype-aware sublane granule

    flat = x.reshape(total)

    # Rare fallback only (never fires for NCHW conv maps where H*W % 128 == 0):
    # pad the flat vector up to the next multiple of 128.
    pad = (-total) % 128
    if pad:
        flat = jnp.pad(flat, (0, pad))
    ptotal = total + pad

    # Lane width: largest power-of-two multiple of 128 (<=1024) that divides ptotal.
    lane = 128
    for cand in (1024, 512, 256):
        if ptotal % cand == 0:
            lane = cand
            break
    rows = ptotal // lane
    x2d = flat.reshape(rows, lane)

    # Block rows targeting ~2 MiB per block, rounded to the sublane granule.
    max_block_rows = max(sublane,
                         (TARGET_BLOCK_BYTES // (lane * itemsize)) // sublane * sublane)

    nblocks = pl.cdiv(rows, max_block_rows)
    if nblocks == 1 and ptotal * itemsize >= MIN_SPLIT_BYTES and rows >= 2 * sublane:
        nblocks = 2   # keep both v7x TensorCores busy for mid-size tensors

    aliases = {0: 0} if donate_input else {}

    if nblocks == 1:
        # Whole array as one block: no grid, no pipeline setup, no row padding
        # (block == full array dims, so the (8,128) rule does not apply).
        out2d = pl.pallas_call(
            _mul_add_kernel,
            out_shape=jax.ShapeDtypeStruct((rows, lane), dtype),
            input_output_aliases=aliases,
        )(x2d)
    else:
        # Balanced, lane-dense blocks; ragged last block handled by Pallas masking.
        block_rows = min(max_block_rows, _round_up(pl.cdiv(rows, nblocks), sublane))
        grid = (pl.cdiv(rows, block_rows),)
        out2d = pl.pallas_call(
            _mul_add_kernel,
            out_shape=jax.ShapeDtypeStruct((rows, lane), dtype),
            grid=grid,
            in_specs=[pl.BlockSpec((block_rows, lane), lambda i: (i, 0))],
            out_specs=pl.BlockSpec((block_rows, lane), lambda i: (i, 0)),
            compiler_params=pltpu.CompilerParams(
                dimension_semantics=("parallel",)
            ),
            input_output_aliases=aliases,
        )(x2d)

    out_flat = out2d.reshape(ptotal)
    if pad:
        out_flat = out_flat[:total]
    return out_flat.reshape(orig_shape)


if __name__ == "__main__":
    key = jax.random.PRNGKey(0)

    # 1) The module's nominal input: [1, 1, 224, 224] -> 49x1024 single
    #    whole-array block, no grid, no padding.
    x6 = jax.random.normal(key, (1, 1, 224, 224), dtype=jnp.float32)
    y = mul_add(x6)
    jax.block_until_ready(y)
    ref = x6 * MUL_CONST + ADD_CONST
    assert y.shape == x6.shape and y.dtype == x6.dtype
    assert jnp.allclose(y, ref, atol=1e-6, rtol=1e-6)

    # 2) Larger f32 input: exercises the multi-block (grid >= 2) path with
    #    balanced, exactly-dividing blocks (rows=784 -> 2 x 392).
    key2 = jax.random.PRNGKey(1)
    xb = jax.random.normal(key2, (1, 16, 224, 224), dtype=jnp.float32)
    yb = mul_add(xb)
    jax.block_until_ready(yb)
    refb = xb * MUL_CONST + ADD_CONST
    assert yb.shape == xb.shape and yb.dtype == xb.dtype
    assert jnp.allclose(yb, refb, atol=1e-6, rtol=1e-6)

    # 3) bf16 input: exercises the dtype-aware sublane granule (16) and a
    #    ragged last block handled by Pallas edge masking.
    key3 = jax.random.PRNGKey(2)
    xc = jax.random.normal(key3, (1, 16, 224, 224), dtype=jnp.bfloat16)
    yc = mul_add(xc)
    jax.block_until_ready(yc)
    refc = (xc.astype(jnp.float32) * MUL_CONST + ADD_CONST).astype(jnp.bfloat16)
    assert yc.shape == xc.shape and yc.dtype == xc.dtype
    assert jnp.allclose(yc.astype(jnp.float32), refc.astype(jnp.float32),
                        atol=2e-2, rtol=2e-2)

    # 4) Odd-sized input: exercises the rare non-128-divisible fallback.
    key4 = jax.random.PRNGKey(3)
    xd = jax.random.normal(key4, (2, 3, 15, 17), dtype=jnp.float32)
    yd = mul_add(xd)
    jax.block_until_ready(yd)
    refd = xd * MUL_CONST + ADD_CONST
    assert yd.shape == xd.shape and yd.dtype == xd.dtype
    assert jnp.allclose(yd, refd, atol=1e-6, rtol=1e-6)

    print("KERNEL_OK")
</pallas_src>

<mosaic_0001>
module attributes {stable_mosaic.version = 11 : i64} {
  func.func @_mul_add_kernel(%arg0: memref<49x1024xf32, #tpu.memory_space<vmem>>, %arg1: memref<49x1024xf32, #tpu.memory_space<vmem>>) attributes {dimension_semantics = [], scalar_prefetch = 0 : i64, scratch_operands = 0 : i64, tpu.core_type = #tpu.core_type<tc>} {
    %c0 = arith.constant 0 : index
    %c0_0 = arith.constant 0 : index
    %0 = vector.load %arg0[%c0, %c0_0] : memref<49x1024xf32, #tpu.memory_space<vmem>>, vector<49x1024xf32>
    %cst = arith.constant 4.480000e-01 : f32
    %1 = vector.broadcast %cst : f32 to vector<49x1024xf32>
    %2 = arith.mulf %0, %1 : vector<49x1024xf32>
    %cst_1 = arith.constant -0.0879999995 : f32
    %3 = vector.broadcast %cst_1 : f32 to vector<49x1024xf32>
    %4 = arith.addf %2, %3 : vector<49x1024xf32>
    %c0_2 = arith.constant 0 : index
    %c0_3 = arith.constant 0 : index
    %5 = vector.load %arg1[%c0_2, %c0_3] : memref<49x1024xf32, #tpu.memory_space<vmem>>, vector<49x1024xf32>
    tpu.vector_store %arg1[%c0_2, %c0_3], %4 {strides = array<i32>} : memref<49x1024xf32, #tpu.memory_space<vmem>>, vector<49x1024xf32>,
    return
  }
}

</mosaic_0001>

<bundles_post_ra>
// kernel: tpu_custom_call.1
= control target key start
LH: loop header
LB: loop body
LE: loop exit
PB: predicated region body
PF: predicated region fallthrough
CT: control target
= control target key end

     0   :  { %6 = vsyncpa [#allocation3], 0  ;;  %s338_s0 = inlined_call_operand.hbm [shape: f32[49,1024], index: 0, kind: input, shape index: {}]   ;;  %s339_s1 = inlined_call_operand.hbm [shape: f32[49,1024], index: 1, kind: output, shape index: {}]  }
   0x1   :  { %7 = vsyncpa [#allocation4], 0  ;;  %s312_s6 = smov [#allocation2]  }
   0x2   :  { %s13_s7 = sshll.u32 %s312_s6, 4  ;;  %s14_s7 = int_to_ptr.vmem [resolvable:$true] %s13_s7 }
   0x3   :  { %s276_s8 = scalar_lea.vmem %s14_s7, 7168  ;;  %p281_p1 = scmp.lt.s32.totalorder %s14_s7, %s14_s7 }
   0x4   :  { %p277_p0 = scmp.ne.s32.totalorder %s14_s7, %s276_s8  ;;  %p282_p2 = scmp.lt.s32.totalorder %s276_s8, %s276_s8 }
   0x6   :  { %p283_p3 = por %p282_p2, %p281_p1 }
   0x8   :  { %p284_p4 = pnand %p283_p3, %p277_p0 }
   0xa   :  { %287 = shalt.err (!%p284_p4)
}
   0xb   :  { %s313_s9 = smov 1024   ;;  %s314_s10 = smov 64  }
   0xc   :  { %19 = dma.hbm_to_vmem [thread:$0]  %s338_s0, 7168, %s14_s7, [#allocation3], %s313_s9, %s313_s9, %s314_s10  }
   0xd   :  { %308 = dma.done.wait [#allocation3], 7168  }
   0xe   :  { %309 = vsyncadd [#allocation3], 4294960128  ;;  %v23_v0 = vld [vmem:[#allocation2] sm:$0xff]  ;;  %v24_v1 = vld [vmem:[#allocation2 + $0x8] sm:$0xff]  ;;  %s315_s0 = smov [#allocation5]  }
   0xf   :  { %v25_v2 = vld [vmem:[#allocation2 + $0x10] sm:$0xff]  ;;  %v79_v3 = vmul.f32 0.448, %v23_v0  ;;  %v80_v4 = vmul.f32 0.448, %v24_v1  ;;  %v26_v6 = vld [vmem:[#allocation2 + $0x18] sm:$0xff] }
  0x10   :  { %v81_v5 = vmul.f32 0.448, %v25_v2  ;;  %v27_v7 = vld [vmem:[#allocation2 + $0x20] sm:$0xff]  ;;  %v28_v8 = vld [vmem:[#allocation2 + $0x28] sm:$0xff]  ;;  %v82_v12 = vmul.f32 0.448, %v26_v6 }
  0x11   :  { %v135_v9 = vadd.f32 -0.088, %v79_v3  ;;  %v136_v10 = vadd.f32 -0.088, %v80_v4  ;;  %v83_v13 = vmul.f32 0.448, %v27_v7 }
  0x12   :  { %v137_v11 = vadd.f32 -0.088, %v81_v5  ;;  %v84_v14 = vmul.f32 0.448, %v28_v8  ;;  %v29_v15 = vld [vmem:[#allocation2 + $0x30] sm:$0xff]  ;;  %v30_v16 = vld [vmem:[#allocation2 + $0x38] sm:$0xff] }
  0x13   :  { %191 = vst [vmem:[#allocation5] sm:$0xff] %v135_v9  ;;  %192 = vst [vmem:[#allocation5 + $0x8] sm:$0xff] %v136_v10  ;;  %v31_v17 = vld [vmem:[#allocation2 + $0x40] sm:$0xff]  ;;  %v138_v18 = vadd.f32 -0.088, %v82_v12  ;;  %v32_v24 = vld [vmem:[#allocation2 + $0x48] sm:$0xff] }
  0x14   :  { %193 = vst [vmem:[#allocation5 + $0x10] sm:$0xff] %v137_v11  ;;  %v139_v19 = vadd.f32 -0.088, %v83_v13  ;;  %v140_v20 = vadd.f32 -0.088, %v84_v14  ;;  %v33_v25 = vld [vmem:[#allocation2 + $0x50] sm:$0xff] }
  0x15   :  { %v85_v21 = vmul.f32 0.448, %v29_v15  ;;  %v86_v22 = vmul.f32 0.448, %v30_v16  ;;  %v87_v23 = vmul.f32 0.448, %v31_v17 }
  0x16   :  { %194 = vst [vmem:[#allocation5 + $0x18] sm:$0xff] %v138_v18  ;;  %195 = vst [vmem:[#allocation5 + $0x20] sm:$0xff] %v139_v19  ;;  %v34_v26 = vld [vmem:[#allocation2 + $0x58] sm:$0xff]  ;;  %v88_v30 = vmul.f32 0.448, %v32_v24  ;;  %v35_v33 = vld [vmem:[#allocation2 + $0x60] sm:$0xff] }
  0x17   :  { %196 = vst [vmem:[#allocation5 + $0x28] sm:$0xff] %v140_v20  ;;  %v141_v27 = vadd.f32 -0.088, %v85_v21  ;;  %v142_v28 = vadd.f32 -0.088, %v86_v22  ;;  %v36_v34 = vld [vmem:[#allocation2 + $0x68] sm:$0xff] }
  0x18   :  { %v143_v29 = vadd.f32 -0.088, %v87_v23  ;;  %v89_v31 = vmul.f32 0.448, %v33_v25  ;;  %v90_v32 = vmul.f32 0.448, %v34_v26 }
  0x19   :  { %197 = vst [vmem:[#allocation5 + $0x30] sm:$0xff] %v141_v27  ;;  %198 = vst [vmem:[#allocation5 + $0x38] sm:$0xff] %v142_v28  ;;  %v37_v35 = vld [vmem:[#allocation2 + $0x70] sm:$0xff]  ;;  %v144_v36 = vadd.f32 -0.088, %v88_v30  ;;  %v38_v42 = vld [vmem:[#allocation2 + $0x78] sm:$0xff] }
  0x1a   :  { %199 = vst [vmem:[#allocation5 + $0x40] sm:$0xff] %v143_v29  ;;  %v145_v37 = vadd.f32 -0.088, %v89_v31  ;;  %v146_v38 = vadd.f32 -0.088, %v90_v32  ;;  %v39_v43 = vld [vmem:[#allocation2 + $0x80] sm:$0xff] }
  0x1b   :  { %v91_v39 = vmul.f32 0.448, %v35_v33  ;;  %v92_v40 = vmul.f32 0.448, %v36_v34  ;;  %v93_v41 = vmul.f32 0.448, %v37_v35 }
  0x1c   :  { %200 = vst [vmem:[#allocation5 + $0x48] sm:$0xff] %v144_v36  ;;  %201 = vst [vmem:[#allocation5 + $0x50] sm:$0xff] %v145_v37  ;;  %v40_v44 = vld [vmem:[#allocation2 + $0x88] sm:$0xff]  ;;  %v94_v48 = vmul.f32 0.448, %v38_v42  ;;  %v41_v51 = vld [vmem:[#allocation2 + $0x90] sm:$0xff] }
  0x1d   :  { %202 = vst [vmem:[#allocation5 + $0x58] sm:$0xff] %v146_v38  ;;  %v147_v45 = vadd.f32 -0.088, %v91_v39  ;;  %v148_v46 = vadd.f32 -0.088, %v92_v40  ;;  %v42_v52 = vld [vmem:[#allocation2 + $0x98] sm:$0xff] }
  0x1e   :  { %v149_v47 = vadd.f32 -0.088, %v93_v41  ;;  %v95_v49 = vmul.f32 0.448, %v39_v43  ;;  %v96_v50 = vmul.f32 0.448, %v40_v44 }
  0x1f   :  { %203 = vst [vmem:[#allocation5 + $0x60] sm:$0xff] %v147_v45  ;;  %204 = vst [vmem:[#allocation5 + $0x68] sm:$0xff] %v148_v46  ;;  %v43_v53 = vld [vmem:[#allocation2 + $0xa0] sm:$0xff]  ;;  %v150_v54 = vadd.f32 -0.088, %v94_v48  ;;  %v44_v60 = vld [vmem:[#allocation2 + $0xa8] sm:$0xff] }
  0x20   :  { %205 = vst [vmem:[#allocation5 + $0x70] sm:$0xff] %v149_v47  ;;  %v151_v55 = vadd.f32 -0.088, %v95_v49  ;;  %v152_v56 = vadd.f32 -0.088, %v96_v50  ;;  %v45_v61 = vld [vmem:[#allocation2 + $0xb0] sm:$0xff] }
  0x21   :  { %v97_v57 = vmul.f32 0.448, %v41_v51  ;;  %v98_v58 = vmul.f32 0.448, %v42_v52  ;;  %v99_v59 = vmul.f32 0.448, %v43_v53 }
  0x22   :  { %206 = vst [vmem:[#allocation5 + $0x78] sm:$0xff] %v150_v54  ;;  %207 = vst [vmem:[#allocation5 + $0x80] sm:$0xff] %v151_v55  ;;  %v46_v62 = vld [vmem:[#allocation2 + $0xb8] sm:$0xff]  ;;  %v100_v2 = vmul.f32 0.448, %v44_v60  ;;  %v47_v5 = vld [vmem:[#allocation2 + $0xc0] sm:$0xff] }
  0x23   :  { %208 = vst [vmem:[#allocation5 + $0x88] sm:$0xff] %v152_v56  ;;  %v153_v63 = vadd.f32 -0.088, %v97_v57  ;;  %v154_v0 = vadd.f32 -0.088, %v98_v58  ;;  %v48_v6 = vld [vmem:[#allocation2 + $0xc8] sm:$0xff] }
  0x24   :  { %v155_v1 = vadd.f32 -0.088, %v99_v59  ;;  %v101_v3 = vmul.f32 0.448, %v45_v61  ;;  %v102_v4 = vmul.f32 0.448, %v46_v62 }
  0x25   :  { %209 = vst [vmem:[#allocation5 + $0x90] sm:$0xff] %v153_v63  ;;  %210 = vst [vmem:[#allocation5 + $0x98] sm:$0xff] %v154_v0  ;;  %v49_v7 = vld [vmem:[#allocation2 + $0xd0] sm:$0xff]  ;;  %v156_v8 = vadd.f32 -0.088, %v100_v2  ;;  %v50_v14 = vld [vmem:[#allocation2 + $0xd8] sm:$0xff] }
  0x26   :  { %211 = vst [vmem:[#allocation5 + $0xa0] sm:$0xff] %v155_v1  ;;  %v157_v9 = vadd.f32 -0.088, %v101_v3  ;;  %v158_v10 = vadd.f32 -0.088, %v102_v4  ;;  %v51_v15 = vld [vmem:[#allocation2 + $0xe0] sm:$0xff] }
  0x27   :  { %v103_v11 = vmul.f32 0.448, %v47_v5  ;;  %v104_v12 = vmul.f32 0.448, %v48_v6  ;;  %v105_v13 = vmul.f32 0.448, %v49_v7 }
  0x28   :  { %212 = vst [vmem:[#allocation5 + $0xa8] sm:$0xff] %v156_v8  ;;  %213 = vst [vmem:[#allocation5 + $0xb0] sm:$0xff] %v157_v9  ;;  %v52_v16 = vld [vmem:[#allocation2 + $0xe8] sm:$0xff]  ;;  %v106_v20 = vmul.f32 0.448, %v50_v14  ;;  %v53_v23 = vld [vmem:[#allocation2 + $0xf0] sm:$0xff] }
  0x29   :  { %214 = vst [vmem:[#allocation5 + $0xb8] sm:$0xff] %v158_v10  ;;  %v159_v17 = vadd.f32 -0.088, %v103_v11  ;;  %v160_v18 = vadd.f32 -0.088, %v104_v12  ;;  %v54_v24 = vld [vmem:[#allocation2 + $0xf8] sm:$0xff] }
  0x2a   :  { %v161_v19 = vadd.f32 -0.088, %v105_v13  ;;  %v107_v21 = vmul.f32 0.448, %v51_v15  ;;  %v108_v22 = vmul.f32 0.448, %v52_v16 }
  0x2b   :  { %215 = vst [vmem:[#allocation5 + $0xc0] sm:$0xff] %v159_v17  ;;  %216 = vst [vmem:[#allocation5 + $0xc8] sm:$0xff] %v160_v18  ;;  %v55_v25 = vld [vmem:[#allocation2 + $0x100] sm:$0xff]  ;;  %v162_v26 = vadd.f32 -0.088, %v106_v20  ;;  %v56_v32 = vld [vmem:[#allocation2 + $0x108] sm:$0xff] }
  0x2c   :  { %217 = vst [vmem:[#allocation5 + $0xd0] sm:$0xff] %v161_v19  ;;  %v163_v27 = vadd.f32 -0.088, %v107_v21  ;;  %v164_v28 = vadd.f32 -0.088, %v108_v22  ;;  %v57_v33 = vld [vmem:[#allocation2 + $0x110] sm:$0xff] }
  0x2d   :  { %v109_v29 = vmul.f32 0.448, %v53_v23  ;;  %v110_v30 = vmul.f32 0.448, %v54_v24  ;;  %v111_v31 = vmul.f32 0.448, %v55_v25 }
  0x2e   :  { %218 = vst [vmem:[#allocation5 + $0xd8] sm:$0xff] %v162_v26  ;;  %219 = vst [vmem:[#allocation5 + $0xe0] sm:$0xff] %v163_v27  ;;  %v58_v34 = vld [vmem:[#allocation2 + $0x118] sm:$0xff]  ;;  %v112_v38 = vmul.f32 0.448, %v56_v32  ;;  %v59_v41 = vld [vmem:[#allocation2 + $0x120] sm:$0xff] }
  0x2f   :  { %220 = vst [vmem:[#allocation5 + $0xe8] sm:$0xff] %v164_v28  ;;  %v165_v35 = vadd.f32 -0.088, %v109_v29  ;;  %v166_v36 = vadd.f32 -0.088, %v110_v30  ;;  %v60_v42 = vld [vmem:[#allocation2 + $0x128] sm:$0xff] }
  0x30   :  { %v167_v37 = vadd.f32 -0.088, %v111_v31  ;;  %v113_v39 = vmul.f32 0.448, %v57_v33  ;;  %v114_v40 = vmul.f32 0.448, %v58_v34 }
  0x31   :  { %221 = vst [vmem:[#allocation5 + $0xf0] sm:$0xff] %v165_v35  ;;  %222 = vst [vmem:[#allocation5 + $0xf8] sm:$0xff] %v166_v36  ;;  %v61_v43 = vld [vmem:[#allocation2 + $0x130] sm:$0xff]  ;;  %v168_v44 = vadd.f32 -0.088, %v112_v38  ;;  %v62_v50 = vld [vmem:[#allocation2 + $0x138] sm:$0xff] }
  0x32   :  { %223 = vst [vmem:[#allocation5 + $0x100] sm:$0xff] %v167_v37  ;;  %v169_v45 = vadd.f32 -0.088, %v113_v39  ;;  %v170_v46 = vadd.f32 -0.088, %v114_v40  ;;  %v63_v51 = vld [vmem:[#allocation2 + $0x140] sm:$0xff] }
  0x33   :  { %v115_v47 = vmul.f32 0.448, %v59_v41  ;;  %v116_v48 = vmul.f32 0.448, %v60_v42  ;;  %v117_v49 = vmul.f32 0.448, %v61_v43 }
  0x34   :  { %224 = vst [vmem:[#allocation5 + $0x108] sm:$0xff] %v168_v44  ;;  %225 = vst [vmem:[#allocation5 + $0x110] sm:$0xff] %v169_v45  ;;  %v64_v52 = vld [vmem:[#allocation2 + $0x148] sm:$0xff]  ;;  %v118_v56 = vmul.f32 0.448, %v62_v50  ;;  %v65_v59 = vld [vmem:[#allocation2 + $0x150] sm:$0xff] }
  0x35   :  { %226 = vst [vmem:[#allocation5 + $0x118] sm:$0xff] %v170_v46  ;;  %v171_v53 = vadd.f32 -0.088, %v115_v47  ;;  %v172_v54 = vadd.f32 -0.088, %v116_v48  ;;  %v66_v60 = vld [vmem:[#allocation2 + $0x158] sm:$0xff] }
  0x36   :  { %v173_v55 = vadd.f32 -0.088, %v117_v49  ;;  %v119_v57 = vmul.f32 0.448, %v63_v51  ;;  %v120_v58 = vmul.f32 0.448, %v64_v52 }
  0x37   :  { %227 = vst [vmem:[#allocation5 + $0x120] sm:$0xff] %v171_v53  ;;  %228 = vst [vmem:[#allocation5 + $0x128] sm:$0xff] %v172_v54  ;;  %v67_v61 = vld [vmem:[#allocation2 + $0x160] sm:$0xff]  ;;  %v174_v62 = vadd.f32 -0.088, %v118_v56  ;;  %v68_v4 = vld [vmem:[#allocation2 + $0x168] sm:$0xff] }
  0x38   :  { %229 = vst [vmem:[#allocation5 + $0x130] sm:$0xff] %v173_v55  ;;  %v175_v63 = vadd.f32 -0.088, %v119_v57  ;;  %v176_v0 = vadd.f32 -0.088, %v120_v58  ;;  %v69_v5 = vld [vmem:[#allocation2 + $0x170] sm:$0xff] }
  0x39   :  { %v121_v1 = vmul.f32 0.448, %v65_v59  ;;  %v122_v2 = vmul.f32 0.448, %v66_v60  ;;  %v123_v3 = vmul.f32 0.448, %v67_v61 }
  0x3a   :  { %230 = vst [vmem:[#allocation5 + $0x138] sm:$0xff] %v174_v62  ;;  %231 = vst [vmem:[#allocation5 + $0x140] sm:$0xff] %v175_v63  ;;  %v70_v6 = vld [vmem:[#allocation2 + $0x178] sm:$0xff]  ;;  %v124_v10 = vmul.f32 0.448, %v68_v4  ;;  %s252_s13 = sshll.u32 %s315_s0, 4  ;;  %s253_s13 = int_to_ptr.vmem [resolvable:$true] %s252_s13 }
  0x3b   :  { %232 = vst [vmem:[#allocation5 + $0x148] sm:$0xff] %v176_v0  ;;  %v177_v7 = vadd.f32 -0.088, %v121_v1  ;;  %v178_v8 = vadd.f32 -0.088, %v122_v2  ;;  %s288_s14 = scalar_lea.vmem %s253_s13, 7168  ;;  %p293_p6 = scmp.lt.s32.totalorder %s253_s13, %s253_s13 }
  0x3c   :  { %v179_v9 = vadd.f32 -0.088, %v123_v3  ;;  %v125_v11 = vmul.f32 0.448, %v69_v5  ;;  %v126_v12 = vmul.f32 0.448, %v70_v6  ;;  %p289_p5 = scmp.ne.s32.totalorder %s253_s13, %s288_s14  ;;  %p294_p7 = scmp.lt.s32.totalorder %s288_s14, %s288_s14 }
  0x3d   :  { %233 = vst [vmem:[#allocation5 + $0x150] sm:$0xff] %v177_v7  ;;  %234 = vst [vmem:[#allocation5 + $0x158] sm:$0xff] %v178_v8  ;;  %v71_v13 = vld [vmem:[#allocation2 + $0x180] sm:$0x1]  ;;  %v72_v14 = vld [vmem:[#allocation2 + $0x188] sm:$0x1] }
  0x3e   :  { %235 = vst [vmem:[#allocation5 + $0x160] sm:$0xff] %v179_v9  ;;  %v73_v15 = vld [vmem:[#allocation2 + $0x190] sm:$0x1]  ;;  %v180_v16 = vadd.f32 -0.088, %v124_v10  ;;  %p295_p8 = por %p294_p7, %p293_p6 }
  0x3f   :  { %v181_v17 = vadd.f32 -0.088, %v125_v11  ;;  %v182_v18 = vadd.f32 -0.088, %v126_v12  ;;  %v127_v19 = vmul.f32 0.448, %v71_v13 }
  0x40   :  { %v128_v20 = vmul.f32 0.448, %v72_v14  ;;  %v129_v21 = vmul.f32 0.448, %v73_v15  ;;  %236 = vst [vmem:[#allocation5 + $0x168] sm:$0xff] %v180_v16  ;;  %p296_p9 = pnand %p295_p8, %p289_p5 }
  0x41   :  { %237 = vst [vmem:[#allocation5 + $0x170] sm:$0xff] %v181_v17  ;;  %238 = vst [vmem:[#allocation5 + $0x178] sm:$0xff] %v182_v18  ;;  %v74_v22 = vld [vmem:[#allocation2 + $0x198] sm:$0x1]  ;;  %v75_v23 = vld [vmem:[#allocation2 + $0x1a0] sm:$0x1] }
  0x42   :  { %v76_v24 = vld [vmem:[#allocation2 + $0x1a8] sm:$0x1]  ;;  %v183_v25 = vadd.f32 -0.088, %v127_v19  ;;  %v184_v26 = vadd.f32 -0.088, %v128_v20 }
  0x43   :  { %v185_v27 = vadd.f32 -0.088, %v129_v21  ;;  %v130_v28 = vmul.f32 0.448, %v74_v22  ;;  %v131_v29 = vmul.f32 0.448, %v75_v23 }
  0x44   :  { %v132_v30 = vmul.f32 0.448, %v76_v24  ;;  %239 = vst [vmem:[#allocation5 + $0x180] sm:$0x1] %v183_v25  ;;  %240 = vst [vmem:[#allocation5 + $0x188] sm:$0x1] %v184_v26 }
  0x45   :  { %241 = vst [vmem:[#allocation5 + $0x190] sm:$0x1] %v185_v27  ;;  %v77_v31 = vld [vmem:[#allocation2 + $0x1b0] sm:$0x1]  ;;  %v78_v32 = vld [vmem:[#allocation2 + $0x1b8] sm:$0x1] }
  0x46   :  { %v186_v33 = vadd.f32 -0.088, %v130_v28  ;;  %v187_v34 = vadd.f32 -0.088, %v131_v29  ;;  %v188_v35 = vadd.f32 -0.088, %v132_v30 }
  0x47   :  { %v133_v36 = vmul.f32 0.448, %v77_v31  ;;  %v134_v37 = vmul.f32 0.448, %v78_v32 }
  0x48   :  { %242 = vst [vmem:[#allocation5 + $0x198] sm:$0x1] %v186_v33  ;;  %243 = vst [vmem:[#allocation5 + $0x1a0] sm:$0x1] %v187_v34 }
  0x49   :  { %244 = vst [vmem:[#allocation5 + $0x1a8] sm:$0x1] %v188_v35  ;;  %v189_v38 = vadd.f32 -0.088, %v133_v36  ;;  %v190_v39 = vadd.f32 -0.088, %v134_v37 }
  0x4b   :  { %245 = vst [vmem:[#allocation5 + $0x1b0] sm:$0x1] %v189_v38  ;;  %246 = vst [vmem:[#allocation5 + $0x1b8] sm:$0x1] %v190_v39 }
  0x4c   :  { %299 = shalt.err (!%p296_p9)
}
  0x4d   :  { %258 = dma.vmem_to_hbm [thread:$0]  %s253_s13, 7168, %s339_s1, [#allocation4], %s313_s9, %s313_s9, %s314_s10  }
  0x4e   :  { %310 = dma.done.wait [#allocation4], 7168  }
  0x4f   :  { %311 = vsyncadd [#allocation4], 4294960128 }
  0x50   :  { %262 = vsyncpa [#allocation3], 1 }
  0x51   :  { %263 = vsyncpa [#allocation4], 1 }

</bundles_post_ra>
